<compile_context>
chip_gen: v5e
topology: v5e:2x2
jax: 0.10.0
libtpu: 0.0.40
codegen_flags: <defaults>
</compile_context>

<pallas_src>
import jax
import jax.numpy as jnp
from jax.experimental import pallas as pl
from jax.experimental.pallas import tpu as pltpu

SEQ_LEN = 7      # the module's MaxPool2d hard-codes seq_len = 7
SEQ_PAD = 8      # one sublane tile
EMB_DIM = 768    # Conv2d kernel width is hard-coded to 768


def _make_textcnn_kernel(filter_sizes, num_filter, num_labels):
    F = num_filter

    def kernel(x_ref, wcat_ref, bcat_ref, lw_ref, lb_ref, out_ref, xpad_ref):
        bt, _, d = x_ref.shape

        # Zero the padded 8th sequence row once; it feeds the matmul but its
        # outputs are never read by any conv tap (max position index is 6).
        @pl.when(pl.program_id(0) == 0)
        def _():
            xpad_ref[:, SEQ_LEN:, :] = jnp.zeros(
                (bt, SEQ_PAD - SEQ_LEN, d), xpad_ref.dtype)

        # In-kernel 7 -> 8 pad: stage the (bt, 7, D) block into a sublane-aligned
        # (bt, 8, D) f32 scratch (replaces the old HBM pad copy).  f32 keeps the
        # (bt, 8, D) -> (bt*8, D) merge exactly tile-aligned (no relayout).
        xpad_ref[:, :SEQ_LEN, :] = x_ref[...].astype(jnp.float32)

        # --- one MXU pass for every tap of every filter size ---
        x2 = xpad_ref[...].reshape(bt * SEQ_PAD, d)              # tile-aligned merge
        y = jnp.dot(x2, wcat_ref[...], preferred_element_type=jnp.float32)
        y = y.reshape(bt, SEQ_PAD, y.shape[-1])                  # tile-aligned split

        bcat = bcat_ref[...]                                     # (1, n*F)
        lw = lw_ref[...]                                         # (L, n*F)
        out = lb_ref[...].astype(jnp.float32)                    # (1, L), broadcasts

        col = 0
        for idx, size in enumerate(filter_sizes):                # static unroll
            l_out = SEQ_LEN - size + 1
            # shift-and-add of the conv taps on the VPU (static slices of y)
            acc = y[:, 0:l_out, col:col + F]
            for k in range(1, size):
                acc = acc + y[:, k:k + l_out, col + k * F:col + (k + 1) * F]
            acc = jnp.maximum(acc + bcat[:, idx * F:(idx + 1) * F], 0.0)
            pooled = jnp.max(acc, axis=1)                        # MaxPool2d((l_out,1))
            # Fold this filter's pooled slab straight into the tiny linear
            # (no hpool scratch / concatenate):  out[b,l] += sum_f pooled[b,f]*lw[l, idx*F+f]
            lw_i = lw[:, idx * F:(idx + 1) * F]                  # (L, F)
            out = out + jnp.sum(pooled[:, None, :] * lw_i[None, :, :], axis=-1)
            col += size * F

        # TODO(synk): nn.Dropout(0.5) is identity at inference time; not applied.
        out_ref[...] = out.astype(out_ref.dtype)

    return kernel


def pack_textcnn_params(conv_ws, conv_bs, lin_w, lin_b, filter_sizes, num_filter):
    """One-time parameter packing (hoisted out of the per-call path)."""
    F = num_filter
    D = conv_ws[0].shape[-1]
    # Wcat^T columns ordered [filter][tap k][out-channel f]  ->  (D, sum(sizes)*F)
    wcat_t = jnp.concatenate(
        [w.transpose(1, 0, 2).reshape(size * F, D)
         for w, size in zip(conv_ws, filter_sizes)], axis=0).T.astype(jnp.float32)
    bcat = jnp.concatenate(
        [b.reshape(1, F) for b in conv_bs], axis=-1).astype(jnp.float32)
    return dict(
        wcat_t=wcat_t,                                           # (D, sum(sizes)*F)
        bcat=bcat,                                               # (1, n*F)
        lin_w=lin_w.astype(jnp.float32),                         # (L, n*F)
        lin_b=lin_b.reshape(1, -1).astype(jnp.float32),          # (1, L)
    )


def _default_b_tile(B, itemsize):
    # Largest divisor of B under a VMEM-safe cap; >= 2 grid steps when possible
    # so the "parallel" axis shards across both v7x TensorCores.  Caps keep
    # (double-buffered x block + f32 staging scratch) well under the 32 MiB
    # scoped-VMEM budget requested below on every generation.
    cap = 512 if itemsize <= 2 else 256
    step = 16 if itemsize <= 2 else 8          # packed-sublane-safe output tiles
    if B <= step or B % step != 0:
        return B                               # single grid step (e.g. demo B=2)
    limit = min(cap, B // 2)
    limit -= limit % step
    for t in range(limit, step - 1, -step):
        if B % t == 0:
            return t
    return B


def textcnn_forward(x, packed, filter_sizes, num_filter, *, b_tile=None):
    B, S, D = x.shape
    assert S == SEQ_LEN and D == EMB_DIM
    num_labels = packed["lin_w"].shape[0]

    if b_tile is None:
        b_tile = _default_b_tile(B, jnp.dtype(x.dtype).itemsize)
    assert B % b_tile == 0, "batch tile must divide the batch"
    if b_tile != B:
        assert b_tile % 8 == 0, "tiled batch blocks must be sublane-aligned"
    grid = (B // b_tile,)

    kernel = _make_textcnn_kernel(tuple(filter_sizes), num_filter, num_labels)

    return pl.pallas_call(
        kernel,
        out_shape=jax.ShapeDtypeStruct((B, num_labels), x.dtype),
        grid=grid,
        in_specs=[
            # x stays un-padded in HBM; 7 equals the full seq extent so this
            # 3-D block satisfies the (8,128) rule.
            pl.BlockSpec((b_tile, S, D), lambda i: (i, 0, 0)),
            pl.BlockSpec(packed["wcat_t"].shape, lambda i: (0, 0)),  # resident
            pl.BlockSpec(packed["bcat"].shape, lambda i: (0, 0)),
            pl.BlockSpec(packed["lin_w"].shape, lambda i: (0, 0)),
            pl.BlockSpec(packed["lin_b"].shape, lambda i: (0, 0)),
        ],
        out_specs=pl.BlockSpec((b_tile, num_labels), lambda i: (i, 0)),
        scratch_shapes=[pltpu.VMEM((b_tile, SEQ_PAD, D), jnp.float32)],
        compiler_params=pltpu.CompilerParams(
            dimension_semantics=("parallel",),
            vmem_limit_bytes=32 * 1024 * 1024),
    )(x, packed["wcat_t"], packed["bcat"], packed["lin_w"], packed["lin_b"])


def textcnn_reference(x, conv_ws, conv_bs, lin_w, lin_b, filter_sizes):
    """Pure-JAX reference matching the PyTorch forward (eval mode)."""
    parts = []
    for w, b, size in zip(conv_ws, conv_bs, filter_sizes):
        l_out = x.shape[1] - size + 1
        conv = jnp.stack(
            [jnp.einsum('bkd,fkd->bf', x[:, p:p + size, :], w)
             for p in range(l_out)],
            axis=1) + b                                   # (B, l_out, F)
        conv = jnp.maximum(conv, 0.0)
        parts.append(jnp.max(conv, axis=1))               # (B, F)
    h = jnp.concatenate(parts, axis=-1)                   # (B, n*F)
    return h @ lin_w.T + lin_b.reshape(1, -1)             # (B, num_labels)


if __name__ == "__main__":
    # Module hyper-parameters (maxpool hard-codes seq_len = 7; conv width = 768).
    filter_sizes = (2, 3, 4)
    num_filter = 4
    num_labels = 3
    num_filter_total = num_filter * len(filter_sizes)

    B, S, D = 2, SEQ_LEN, EMB_DIM
    key = jax.random.PRNGKey(0)
    kx, *kp = jax.random.split(key, 2 + 3 * len(filter_sizes))

    x = jax.random.normal(kx, (B, S, D), dtype=jnp.float32)

    # Deterministic synthetic parameters (shapes follow the module's __init__).
    conv_ws, conv_bs = [], []
    for i, size in enumerate(filter_sizes):
        conv_ws.append(0.02 * jax.random.normal(
            kp[2 * i], (num_filter, size, D), dtype=jnp.float32))
        conv_bs.append(0.1 * jax.random.normal(
            kp[2 * i + 1], (1, num_filter), dtype=jnp.float32))
    lin_w = 0.05 * jax.random.normal(
        kp[2 * len(filter_sizes)], (num_labels, num_filter_total),
        dtype=jnp.float32)
    lin_b = jnp.ones((1, num_labels), dtype=jnp.float32)   # nn.Parameter(torch.ones)

    # Pack parameters once (hoisted out of the per-call path).
    packed = pack_textcnn_params(conv_ws, conv_bs, lin_w, lin_b,
                                 filter_sizes, num_filter)
    ref = textcnn_reference(x, conv_ws, conv_bs, lin_w, lin_b, filter_sizes)

    # Exact f32 path: bit-for-bit parity with the f32 reference.
    out_f32 = jax.block_until_ready(
        textcnn_forward(x, packed, filter_sizes, num_filter))
    assert out_f32.shape == (B, num_labels)
    assert jnp.allclose(out_f32, ref, atol=1e-4, rtol=1e-4), (out_f32, ref)

    # bf16-activation path (production: upstream encoder emits bf16, halving the
    # dominant x HBM read).  bf16 inputs cannot meet 1e-4 parity -> looser check.
    out_bf16 = jax.block_until_ready(
        textcnn_forward(x.astype(jnp.bfloat16), packed, filter_sizes, num_filter))
    assert out_bf16.shape == (B, num_labels)
    assert jnp.allclose(out_bf16.astype(jnp.float32), ref, atol=3e-2, rtol=3e-2), (
        out_bf16, ref)

    print("KERNEL_OK")
</pallas_src>

<mosaic_0001>
module attributes {stable_mosaic.version = 11 : i64} {
  func.func @kernel(%arg0: i32, %arg1: memref<2x7x768xf32, #tpu.memory_space<vmem>>, %arg2: memref<768x36xf32, #tpu.memory_space<vmem>>, %arg3: memref<1x12xf32, #tpu.memory_space<vmem>>, %arg4: memref<3x12xf32, #tpu.memory_space<vmem>>, %arg5: memref<1x3xf32, #tpu.memory_space<vmem>>, %arg6: memref<2x3xf32, #tpu.memory_space<vmem>>, %arg7: memref<2x8x768xf32, #tpu.memory_space<vmem>>) attributes {dimension_semantics = [#tpu.dimension_semantics<parallel>], iteration_bounds = array<i64: 1>, scalar_prefetch = 0 : i64, scratch_operands = 1 : i64, tpu.core_type = #tpu.core_type<tc>, window_params = [{transform_indices = @transform_0, window_bounds = array<i64: 2, 7, 768>}, {pipeline_mode = #tpu.pipeline_mode<synchronous>, transform_indices = @transform_1, window_bounds = array<i64: 768, 36>}, {pipeline_mode = #tpu.pipeline_mode<synchronous>, transform_indices = @transform_2, window_bounds = array<i64: 1, 12>}, {pipeline_mode = #tpu.pipeline_mode<synchronous>, transform_indices = @transform_3, window_bounds = array<i64: 3, 12>}, {pipeline_mode = #tpu.pipeline_mode<synchronous>, transform_indices = @transform_4, window_bounds = array<i64: 1, 3>}, {transform_indices = @transform_5, window_bounds = array<i64: 2, 3>}]} {
    %c0_i32 = arith.constant 0 : i32
    %0 = arith.cmpi eq, %arg0, %c0_i32 : i32
    %1 = arith.extui %0 : i1 to i32
    %c0_i32_0 = arith.constant 0 : i32
    %2 = arith.cmpi ne, %1, %c0_i32_0 : i32
    scf.if %2 {
      %cst_28 = arith.constant 0.000000e+00 : f32
      %75 = vector.broadcast %cst_28 : f32 to vector<2x1x768xf32>
      %c0_29 = arith.constant 0 : index
      %c7 = arith.constant 7 : index
      %c0_30 = arith.constant 0 : index
      %76 = vector.load %arg7[%c0_29, %c7, %c0_30] : memref<2x8x768xf32, #tpu.memory_space<vmem>>, vector<2x1x768xf32>
      tpu.vector_store %arg7[%c0_29, %c7, %c0_30], %75 {strides = array<i32>} : memref<2x8x768xf32, #tpu.memory_space<vmem>>, vector<2x1x768xf32>,
    } else {
    }
    %c0 = arith.constant 0 : index
    %c0_1 = arith.constant 0 : index
    %c0_2 = arith.constant 0 : index
    %3 = vector.load %arg1[%c0, %c0_1, %c0_2] : memref<2x7x768xf32, #tpu.memory_space<vmem>>, vector<2x7x768xf32>
    %c0_3 = arith.constant 0 : index
    %c0_4 = arith.constant 0 : index
    %c0_5 = arith.constant 0 : index
    %4 = vector.load %arg7[%c0_3, %c0_4, %c0_5] : memref<2x8x768xf32, #tpu.memory_space<vmem>>, vector<2x7x768xf32>
    tpu.vector_store %arg7[%c0_3, %c0_4, %c0_5], %3 {strides = array<i32>} : memref<2x8x768xf32, #tpu.memory_space<vmem>>, vector<2x7x768xf32>,
    %c0_6 = arith.constant 0 : index
    %c0_7 = arith.constant 0 : index
    %c0_8 = arith.constant 0 : index
    %5 = vector.load %arg7[%c0_6, %c0_7, %c0_8] : memref<2x8x768xf32, #tpu.memory_space<vmem>>, vector<2x8x768xf32>
    %6 = vector.shape_cast %5 : vector<2x8x768xf32> to vector<16x768xf32>
    %c0_9 = arith.constant 0 : index
    %c0_10 = arith.constant 0 : index
    %7 = vector.load %arg2[%c0_9, %c0_10] : memref<768x36xf32, #tpu.memory_space<vmem>>, vector<768x36xf32>
    %cst = arith.constant dense<0.000000e+00> : vector<16x36xf32>
    %8 = tpu.matmul %6, %7, %cst {dimension_numbers = #tpu.dot_dimension_numbers<[1], [0], [0], [1], [0, 0, 1, 1], [], []>} : vector<16x768xf32>, vector<768x36xf32>, vector<16x36xf32> -> vector<16x36xf32>
    %9 = vector.shape_cast %8 : vector<16x36xf32> to vector<2x8x36xf32>
    %c0_11 = arith.constant 0 : index
    %c0_12 = arith.constant 0 : index
    %10 = vector.load %arg3[%c0_11, %c0_12] : memref<1x12xf32, #tpu.memory_space<vmem>>, vector<1x12xf32>
    %c0_13 = arith.constant 0 : index
    %c0_14 = arith.constant 0 : index
    %11 = vector.load %arg4[%c0_13, %c0_14] : memref<3x12xf32, #tpu.memory_space<vmem>>, vector<3x12xf32>
    %c0_15 = arith.constant 0 : index
    %c0_16 = arith.constant 0 : index
    %12 = vector.load %arg5[%c0_15, %c0_16] : memref<1x3xf32, #tpu.memory_space<vmem>>, vector<1x3xf32>
    %13 = vector.extract_strided_slice %9 {offsets = [0, 0, 0], sizes = [2, 6, 4], strides = [1, 1, 1]} : vector<2x8x36xf32> to vector<2x6x4xf32>
    %14 = vector.extract_strided_slice %9 {offsets = [0, 1, 4], sizes = [2, 6, 4], strides = [1, 1, 1]} : vector<2x8x36xf32> to vector<2x6x4xf32>
    %15 = arith.addf %13, %14 : vector<2x6x4xf32>
    %16 = vector.extract_strided_slice %10 {offsets = [0, 0], sizes = [1, 4], strides = [1, 1]} : vector<1x12xf32> to vector<1x4xf32>
    %17 = vector.shape_cast %16 : vector<1x4xf32> to vector<1x1x4xf32>
    %18 = vector.broadcast %17 : vector<1x1x4xf32> to vector<2x6x4xf32>
    %19 = arith.addf %15, %18 : vector<2x6x4xf32>
    %cst_17 = arith.constant 0.000000e+00 : f32
    %20 = vector.broadcast %cst_17 : f32 to vector<2x6x4xf32>
    %21 = arith.maximumf %19, %20 : vector<2x6x4xf32>
    %cst_18 = arith.constant dense<0xFF800000> : vector<2x4xf32>
    %22 = vector.multi_reduction <maximumf>, %21, %cst_18 [1] : vector<2x6x4xf32> to vector<2x4xf32>
    %23 = vector.extract_strided_slice %11 {offsets = [0, 0], sizes = [3, 4], strides = [1, 1]} : vector<3x12xf32> to vector<3x4xf32>
    %24 = vector.shape_cast %22 : vector<2x4xf32> to vector<2x1x4xf32>
    %25 = vector.shape_cast %23 : vector<3x4xf32> to vector<1x3x4xf32>
    %26 = vector.broadcast %24 : vector<2x1x4xf32> to vector<2x3x4xf32>
    %27 = vector.broadcast %25 : vector<1x3x4xf32> to vector<2x3x4xf32>
    %28 = arith.mulf %26, %27 : vector<2x3x4xf32>
    %cst_19 = arith.constant dense<0.000000e+00> : vector<2x3xf32>
    %29 = vector.multi_reduction <add>, %28, %cst_19 [2] : vector<2x3x4xf32> to vector<2x3xf32>
    %30 = vector.broadcast %12 : vector<1x3xf32> to vector<2x3xf32>
    %31 = arith.addf %30, %29 : vector<2x3xf32>
    %32 = vector.extract_strided_slice %9 {offsets = [0, 0, 8], sizes = [2, 5, 4], strides = [1, 1, 1]} : vector<2x8x36xf32> to vector<2x5x4xf32>
    %33 = vector.extract_strided_slice %9 {offsets = [0, 1, 12], sizes = [2, 5, 4], strides = [1, 1, 1]} : vector<2x8x36xf32> to vector<2x5x4xf32>
    %34 = arith.addf %32, %33 : vector<2x5x4xf32>
    %35 = vector.extract_strided_slice %9 {offsets = [0, 2, 16], sizes = [2, 5, 4], strides = [1, 1, 1]} : vector<2x8x36xf32> to vector<2x5x4xf32>
    %36 = arith.addf %34, %35 : vector<2x5x4xf32>
    %37 = vector.extract_strided_slice %10 {offsets = [0, 4], sizes = [1, 4], strides = [1, 1]} : vector<1x12xf32> to vector<1x4xf32>
    %38 = vector.shape_cast %37 : vector<1x4xf32> to vector<1x1x4xf32>
    %39 = vector.broadcast %38 : vector<1x1x4xf32> to vector<2x5x4xf32>
    %40 = arith.addf %36, %39 : vector<2x5x4xf32>
    %cst_20 = arith.constant 0.000000e+00 : f32
    %41 = vector.broadcast %cst_20 : f32 to vector<2x5x4xf32>
    %42 = arith.maximumf %40, %41 : vector<2x5x4xf32>
    %cst_21 = arith.constant dense<0xFF800000> : vector<2x4xf32>
    %43 = vector.multi_reduction <maximumf>, %42, %cst_21 [1] : vector<2x5x4xf32> to vector<2x4xf32>
    %44 = vector.extract_strided_slice %11 {offsets = [0, 4], sizes = [3, 4], strides = [1, 1]} : vector<3x12xf32> to vector<3x4xf32>
    %45 = vector.shape_cast %43 : vector<2x4xf32> to vector<2x1x4xf32>
    %46 = vector.shape_cast %44 : vector<3x4xf32> to vector<1x3x4xf32>
    %47 = vector.broadcast %45 : vector<2x1x4xf32> to vector<2x3x4xf32>
    %48 = vector.broadcast %46 : vector<1x3x4xf32> to vector<2x3x4xf32>
    %49 = arith.mulf %47, %48 : vector<2x3x4xf32>
    %cst_22 = arith.constant dense<0.000000e+00> : vector<2x3xf32>
    %50 = vector.multi_reduction <add>, %49, %cst_22 [2] : vector<2x3x4xf32> to vector<2x3xf32>
    %51 = arith.addf %31, %50 : vector<2x3xf32>
    %52 = vector.extract_strided_slice %9 {offsets = [0, 0, 20], sizes = [2, 4, 4], strides = [1, 1, 1]} : vector<2x8x36xf32> to vector<2x4x4xf32>
    %53 = vector.extract_strided_slice %9 {offsets = [0, 1, 24], sizes = [2, 4, 4], strides = [1, 1, 1]} : vector<2x8x36xf32> to vector<2x4x4xf32>
    %54 = arith.addf %52, %53 : vector<2x4x4xf32>
    %55 = vector.extract_strided_slice %9 {offsets = [0, 2, 28], sizes = [2, 4, 4], strides = [1, 1, 1]} : vector<2x8x36xf32> to vector<2x4x4xf32>
    %56 = arith.addf %54, %55 : vector<2x4x4xf32>
    %57 = vector.extract_strided_slice %9 {offsets = [0, 3, 32], sizes = [2, 4, 4], strides = [1, 1, 1]} : vector<2x8x36xf32> to vector<2x4x4xf32>
    %58 = arith.addf %56, %57 : vector<2x4x4xf32>
    %59 = vector.extract_strided_slice %10 {offsets = [0, 8], sizes = [1, 4], strides = [1, 1]} : vector<1x12xf32> to vector<1x4xf32>
    %60 = vector.shape_cast %59 : vector<1x4xf32> to vector<1x1x4xf32>
    %61 = vector.broadcast %60 : vector<1x1x4xf32> to vector<2x4x4xf32>
    %62 = arith.addf %58, %61 : vector<2x4x4xf32>
    %cst_23 = arith.constant 0.000000e+00 : f32
    %63 = vector.broadcast %cst_23 : f32 to vector<2x4x4xf32>
    %64 = arith.maximumf %62, %63 : vector<2x4x4xf32>
    %cst_24 = arith.constant dense<0xFF800000> : vector<2x4xf32>
    %65 = vector.multi_reduction <maximumf>, %64, %cst_24 [1] : vector<2x4x4xf32> to vector<2x4xf32>
    %66 = vector.extract_strided_slice %11 {offsets = [0, 8], sizes = [3, 4], strides = [1, 1]} : vector<3x12xf32> to vector<3x4xf32>
    %67 = vector.shape_cast %65 : vector<2x4xf32> to vector<2x1x4xf32>
    %68 = vector.shape_cast %66 : vector<3x4xf32> to vector<1x3x4xf32>
    %69 = vector.broadcast %67 : vector<2x1x4xf32> to vector<2x3x4xf32>
    %70 = vector.broadcast %68 : vector<1x3x4xf32> to vector<2x3x4xf32>
    %71 = arith.mulf %69, %70 : vector<2x3x4xf32>
    %cst_25 = arith.constant dense<0.000000e+00> : vector<2x3xf32>
    %72 = vector.multi_reduction <add>, %71, %cst_25 [2] : vector<2x3x4xf32> to vector<2x3xf32>
    %73 = arith.addf %51, %72 : vector<2x3xf32>
    %c0_26 = arith.constant 0 : index
    %c0_27 = arith.constant 0 : index
    %74 = vector.load %arg6[%c0_26, %c0_27] : memref<2x3xf32, #tpu.memory_space<vmem>>, vector<2x3xf32>
    tpu.vector_store %arg6[%c0_26, %c0_27], %73 {strides = array<i32>} : memref<2x3xf32, #tpu.memory_space<vmem>>, vector<2x3xf32>,
    return
  }
  func.func @transform_0(%arg0: i32) -> (i32, i32, i32) {
    %c0_i32 = arith.constant 0 : i32
    %c0_i32_0 = arith.constant 0 : i32
    %c0_i32_1 = arith.constant 0 : i32
    return %arg0, %c0_i32, %c0_i32_0 : i32, i32, i32
  }
  func.func @transform_1(%arg0: i32) -> (i32, i32) {
    %c0_i32 = arith.constant 0 : i32
    %c0_i32_0 = arith.constant 0 : i32
    %c0_i32_1 = arith.constant 0 : i32
    return %c0_i32, %c0_i32_0 : i32, i32
  }
  func.func @transform_2(%arg0: i32) -> (i32, i32) {
    %c0_i32 = arith.constant 0 : i32
    %c0_i32_0 = arith.constant 0 : i32
    %c0_i32_1 = arith.constant 0 : i32
    return %c0_i32, %c0_i32_0 : i32, i32
  }
  func.func @transform_3(%arg0: i32) -> (i32, i32) {
    %c0_i32 = arith.constant 0 : i32
    %c0_i32_0 = arith.constant 0 : i32
    %c0_i32_1 = arith.constant 0 : i32
    return %c0_i32, %c0_i32_0 : i32, i32
  }
  func.func @transform_4(%arg0: i32) -> (i32, i32) {
    %c0_i32 = arith.constant 0 : i32
    %c0_i32_0 = arith.constant 0 : i32
    %c0_i32_1 = arith.constant 0 : i32
    return %c0_i32, %c0_i32_0 : i32, i32
  }
  func.func @transform_5(%arg0: i32) -> (i32, i32) {
    %c0_i32 = arith.constant 0 : i32
    %c0_i32_0 = arith.constant 0 : i32
    return %arg0, %c0_i32 : i32, i32
  }
}

</mosaic_0001>

<bundles_post_ra>
// kernel: tpu_custom_call.1
= control target key start
LH: loop header
LB: loop body
LE: loop exit
PB: predicated region body
PF: predicated region fallthrough
CT: control target
= control target key end

     0   :  { %v25_v6 = vlaneseq  ;;  %v567_v16 = vmov 0.0   ;;  %s986_s0 = inlined_call_operand.vmem [shape: f32[2,7,768], index: 0, kind: input, shape index: {}]   ;;  %s987_s1 = inlined_call_operand.vmem [shape: f32[768,36], index: 1, kind: input, shape index: {}]   ;;  %s988_s2 = inlined_call_operand.vmem [shape: f32[1,12], index: 2, kind: input, shape index: {}]   ;;  %s989_s3 = inlined_call_operand.vmem [shape: f32[3,12], index: 3, kind: input, shape index: {}]   ;;  %s990_s4 = inlined_call_operand.vmem [shape: f32[1,3], index: 4, kind: input, shape index: {}]   ;;  %s991_s5 = inlined_call_operand.hbm [shape: f32[2,3], index: 5, kind: output, shape index: {}]  }
   0x1   :  { %v86_v0 = vld [vmem:[%s987_s1 + $0x78] sm:$0xff]  ;;  %v85_v2 = vld [vmem:[%s987_s1 + $0x70] sm:$0xff]  ;;  %v84_v7 = vld [vmem:[%s987_s1 + $0x68] sm:$0xff] }
   0x2   :  { %v118_v1 = vld [vmem:[%s987_s1 + $0x178] sm:$0xff]  ;;  %167 = vmatpush.msra.mxu0 %v86_v0  ;;  %v117_v4 = vld [vmem:[%s987_s1 + $0x170] sm:$0xff]  ;;  %v116_v9 = vld [vmem:[%s987_s1 + $0x168] sm:$0xff]  ;;  %vm639_vm0 = vcmp.lt.s32.totalorder %v25_v6, 768 }
   0x3   :  { %213 = vmatpush.msra.mxu2 %v118_v1  ;;  %v102_v3 = vld [vmem:[%s987_s1 + $0xf8] sm:$0xff]  ;;  %v101_v8 = vld [vmem:[%s987_s1 + $0xf0] sm:$0xff]  ;;  %v100_v11 = vld [vmem:[%s987_s1 + $0xe8] sm:$0xff]  ;;  %30 = vst.msk [vmem:[#allocation2 + $0x7] ss:$8 sm:$0xf] %vm639_vm0, %v567_v16 }
   0x4   :  { %v134_v5 = vld [vmem:[%s987_s1 + $0x1f8] sm:$0xff]  ;;  %190 = vmatpush.msra.mxu1 %v102_v3  ;;  %168 = vmatpush.msra.mxu0 %v85_v2  ;;  %v133_v10 = vld [vmem:[%s987_s1 + $0x1f0] sm:$0xff]  ;;  %v83_v13 = vld [vmem:[%s987_s1 + $0x60] sm:$0xff]  ;;  %31 = vst.msk [vmem:[#allocation2 + $0x7] ss:$8 sm:$0x30] %vm639_vm0, %v567_v16 }
   0x5   :  { %236 = vmatpush.msra.mxu3 %v134_v5  ;;  %214 = vmatpush.msra.mxu2 %v117_v4  ;;  %v115_v14 = vld [vmem:[%s987_s1 + $0x160] sm:$0xff]  ;;  %v132_v15 = vld [vmem:[%s987_s1 + $0x1e8] sm:$0xff]  ;;  %v82_v19 = vld [vmem:[%s987_s1 + $0x58] sm:$0xff]  ;;  %33 = vst.msk [vmem:[#allocation2 + $0x37] ss:$8 sm:$0xf] %vm639_vm0, %v567_v16 }
   0x6   :  { %191 = vmatpush.msra.mxu1 %v101_v8  ;;  %169 = vmatpush.msra.mxu0 %v84_v7  ;;  %v99_v17 = vld [vmem:[%s987_s1 + $0xe0] sm:$0xff]  ;;  %v114_v20 = vld [vmem:[%s987_s1 + $0x158] sm:$0xff]  ;;  %34 = vst.msk [vmem:[#allocation2 + $0x37] ss:$8 sm:$0x30] %vm639_vm0, %v567_v16  ;;  %v81_v23 = vld [vmem:[%s987_s1 + $0x50] sm:$0xff] }
   0x7   :  { %237 = vmatpush.msra.mxu3 %v133_v10  ;;  %215 = vmatpush.msra.mxu2 %v116_v9  ;;  %v131_v18 = vld [vmem:[%s987_s1 + $0x1e0] sm:$0xff]  ;;  %v98_v21 = vld [vmem:[%s987_s1 + $0xd8] sm:$0xff]  ;;  %v113_v24 = vld [vmem:[%s987_s1 + $0x150] sm:$0xff] }
   0x8   :  { %192 = vmatpush.msra.mxu1 %v100_v11  ;;  %170 = vmatpush.msra.mxu0 %v83_v13  ;;  %v130_v22 = vld [vmem:[%s987_s1 + $0x1d8] sm:$0xff]  ;;  %v97_v25 = vld [vmem:[%s987_s1 + $0xd0] sm:$0xff]  ;;  %v80_v27 = vld [vmem:[%s987_s1 + $0x48] sm:$0xff] }
   0x9   :  { %238 = vmatpush.msra.mxu3 %v132_v15  ;;  %216 = vmatpush.msra.mxu2 %v115_v14  ;;  %v129_v26 = vld [vmem:[%s987_s1 + $0x1d0] sm:$0xff]  ;;  %v112_v28 = vld [vmem:[%s987_s1 + $0x148] sm:$0xff]  ;;  %v79_v31 = vld [vmem:[%s987_s1 + $0x40] sm:$0xff] }
   0xa   :  { %193 = vmatpush.msra.mxu1 %v99_v17  ;;  %171 = vmatpush.msra.mxu0 %v82_v19  ;;  %v96_v29 = vld [vmem:[%s987_s1 + $0xc8] sm:$0xff]  ;;  %v111_v32 = vld [vmem:[%s987_s1 + $0x140] sm:$0xff]  ;;  %v78_v35 = vld [vmem:[%s987_s1 + $0x38] sm:$0xff] }
   0xb   :  { %239 = vmatpush.msra.mxu3 %v131_v18  ;;  %217 = vmatpush.msra.mxu2 %v114_v20  ;;  %v128_v30 = vld [vmem:[%s987_s1 + $0x1c8] sm:$0xff]  ;;  %v95_v33 = vld [vmem:[%s987_s1 + $0xc0] sm:$0xff]  ;;  %v110_v36 = vld [vmem:[%s987_s1 + $0x138] sm:$0xff] }
   0xc   :  { %194 = vmatpush.msra.mxu1 %v98_v21  ;;  %172 = vmatpush.msra.mxu0 %v81_v23  ;;  %v127_v34 = vld [vmem:[%s987_s1 + $0x1c0] sm:$0xff]  ;;  %v94_v37 = vld [vmem:[%s987_s1 + $0xb8] sm:$0xff]  ;;  %v77_v39 = vld [vmem:[%s987_s1 + $0x30] sm:$0xff] }
   0xd   :  { %240 = vmatpush.msra.mxu3 %v130_v22  ;;  %218 = vmatpush.msra.mxu2 %v113_v24  ;;  %v126_v38 = vld [vmem:[%s987_s1 + $0x1b8] sm:$0xff]  ;;  %v109_v40 = vld [vmem:[%s987_s1 + $0x130] sm:$0xff]  ;;  %v76_v43 = vld [vmem:[%s987_s1 + $0x28] sm:$0xff] }
   0xe   :  { %195 = vmatpush.msra.mxu1 %v97_v25  ;;  %173 = vmatpush.msra.mxu0 %v80_v27  ;;  %v93_v41 = vld [vmem:[%s987_s1 + $0xb0] sm:$0xff]  ;;  %v108_v44 = vld [vmem:[%s987_s1 + $0x128] sm:$0xff]  ;;  %v75_v47 = vld [vmem:[%s987_s1 + $0x20] sm:$0xff] }
   0xf   :  { %241 = vmatpush.msra.mxu3 %v129_v26  ;;  %219 = vmatpush.msra.mxu2 %v112_v28  ;;  %v125_v42 = vld [vmem:[%s987_s1 + $0x1b0] sm:$0xff]  ;;  %v92_v45 = vld [vmem:[%s987_s1 + $0xa8] sm:$0xff]  ;;  %v107_v48 = vld [vmem:[%s987_s1 + $0x120] sm:$0xff] }
  0x10   :  { %196 = vmatpush.msra.mxu1 %v96_v29  ;;  %174 = vmatpush.msra.mxu0 %v79_v31  ;;  %v124_v46 = vld [vmem:[%s987_s1 + $0x1a8] sm:$0xff]  ;;  %v91_v49 = vld [vmem:[%s987_s1 + $0xa0] sm:$0xff]  ;;  %v74_v51 = vld [vmem:[%s987_s1 + $0x18] sm:$0xff] }
  0x11   :  { %242 = vmatpush.msra.mxu3 %v128_v30  ;;  %220 = vmatpush.msra.mxu2 %v111_v32  ;;  %v123_v50 = vld [vmem:[%s987_s1 + $0x1a0] sm:$0xff]  ;;  %v106_v52 = vld [vmem:[%s987_s1 + $0x118] sm:$0xff]  ;;  %v73_v53 = vld [vmem:[%s987_s1 + $0x10] sm:$0xff] }
  0x12   :  { %197 = vmatpush.msra.mxu1 %v95_v33  ;;  %175 = vmatpush.msra.mxu0 %v78_v35  ;;  %v90_v54 = vld [vmem:[%s987_s1 + $0x98] sm:$0xff]  ;;  %v105_v56 = vld [vmem:[%s987_s1 + $0x110] sm:$0xff]  ;;  %v72_v57 = vld [vmem:[%s987_s1 + $0x8] sm:$0xff] }
  0x13   :  { %243 = vmatpush.msra.mxu3 %v127_v34  ;;  %221 = vmatpush.msra.mxu2 %v110_v36  ;;  %v122_v55 = vld [vmem:[%s987_s1 + $0x198] sm:$0xff]  ;;  %v89_v58 = vld [vmem:[%s987_s1 + $0x90] sm:$0xff]  ;;  %v104_v59 = vld [vmem:[%s987_s1 + $0x108] sm:$0xff] }
  0x14   :  { %198 = vmatpush.msra.mxu1 %v94_v37  ;;  %176 = vmatpush.msra.mxu0 %v77_v39  ;;  %v121_v60 = vld [vmem:[%s987_s1 + $0x190] sm:$0xff]  ;;  %v88_v62 = vld [vmem:[%s987_s1 + $0x88] sm:$0xff]  ;;  %v38_v0 = vld [vmem:[%s986_s0 + $0x18] sm:$0x7f] }
  0x15   :  { %244 = vmatpush.msra.mxu3 %v126_v38  ;;  %222 = vmatpush.msra.mxu2 %v109_v40  ;;  %v37_v61 = vld [vmem:[%s986_s0 + $0x10] sm:$0x7f]  ;;  %v120_v63 = vld [vmem:[%s987_s1 + $0x188] sm:$0xff]  ;;  %50 = vst [vmem:[#allocation2 + $0x18] sm:$0x7f] %v38_v0  ;;  %v71_v3 = vld [vmem:[%s987_s1] sm:$0xff] }
  0x16   :  { %199 = vmatpush.msra.mxu1 %v93_v41  ;;  %177 = vmatpush.msra.mxu0 %v76_v43  ;;  %49 = vst [vmem:[#allocation2 + $0x10] sm:$0x7f] %v37_v61  ;;  %v35_v1 = vld [vmem:[%s986_s0] sm:$0x7f]  ;;  %v36_v2 = vld [vmem:[%s986_s0 + $0x8] sm:$0x7f] }
  0x17   :  { %245 = vmatpush.msra.mxu3 %v125_v42  ;;  %223 = vmatpush.msra.mxu2 %v108_v44  ;;  %v103_v4 = vld [vmem:[%s987_s1 + $0x100] sm:$0xff]  ;;  %47 = vst [vmem:[#allocation2] sm:$0x7f] %v35_v1  ;;  %v150_v5 = vld [vmem:[%s987_s1 + $0x278] sm:$0xff]  ;;  %v44_v10 = vld [vmem:[%s986_s0 + $0x48] sm:$0x7f] }
  0x18   :  { %200 = vmatpush.msra.mxu1 %v92_v45  ;;  %178 = vmatpush.msra.mxu0 %v75_v47  ;;  %48 = vst [vmem:[#allocation2 + $0x8] sm:$0x7f] %v36_v2  ;;  %v43_v7 = vld [vmem:[%s986_s0 + $0x40] sm:$0x7f]  ;;  %v149_v11 = vld [vmem:[%s987_s1 + $0x270] sm:$0xff]  ;;  %v166_v13 = vld [vmem:[%s987_s1 + $0x2f8] sm:$0xff] }
  0x19   :  { %246 = vmatpush.msra.mxu3 %v124_v46  ;;  %224 = vmatpush.msra.mxu2 %v107_v48  ;;  %v87_v8 = vld [vmem:[%s987_s1 + $0x80] sm:$0xff]  ;;  %55 = vst [vmem:[#allocation2 + $0x40] sm:$0x7f] %v43_v7  ;;  %v41_v12 = vld [vmem:[%s986_s0 + $0x30] sm:$0x7f]  ;;  %v148_v15 = vld [vmem:[%s987_s1 + $0x268] sm:$0xff] }
  0x1a   :  { %201 = vmatpush.msra.mxu1 %v91_v49  ;;  %179 = vmatpush.msra.mxu0 %v74_v51  ;;  %v119_v9 = vld [vmem:[%s987_s1 + $0x180] sm:$0xff]  ;;  %56 = vst [vmem:[#allocation2 + $0x48] sm:$0x7f] %v44_v10  ;;  %v42_v14 = vld [vmem:[%s986_s0 + $0x38] sm:$0x7f]  ;;  %v165_v16 = vld [vmem:[%s987_s1 + $0x2f0] sm:$0xff] }
  0x1b   :  { %247 = vmatpush.msra.mxu3 %v123_v50  ;;  %225 = vmatpush.msra.mxu2 %v106_v52  ;;  %53 = vst [vmem:[#allocation2 + $0x30] sm:$0x7f] %v41_v12  ;;  %v147_v17 = vld [vmem:[%s987_s1 + $0x260] sm:$0xff]  ;;  %v164_v19 = vld [vmem:[%s987_s1 + $0x2e8] sm:$0xff]  ;;  %v45_v20 = vld [vmem:[%s986_s0 + $0x50] sm:$0x7f] }
  0x1c   :  { %202 = vmatpush.msra.mxu1 %v90_v54  ;;  %180 = vmatpush.msra.mxu0 %v73_v53  ;;  %54 = vst [vmem:[#allocation2 + $0x38] sm:$0x7f] %v42_v14  ;;  %v39_v18 = vld [vmem:[%s986_s0 + $0x20] sm:$0x7f]  ;;  %v146_v21 = vld [vmem:[%s987_s1 + $0x258] sm:$0xff]  ;;  %v145_v25 = vld [vmem:[%s987_s1 + $0x250] sm:$0xff] }
  0x1d   :  { %248 = vmatpush.msra.mxu3 %v122_v55  ;;  %226 = vmatpush.msra.mxu2 %v105_v56  ;;  %51 = vst [vmem:[#allocation2 + $0x20] sm:$0x7f] %v39_v18  ;;  %v40_v22 = vld [vmem:[%s986_s0 + $0x28] sm:$0x7f]  ;;  %v163_v23 = vld [vmem:[%s987_s1 + $0x2e0] sm:$0xff]  ;;  %v162_v26 = vld [vmem:[%s987_s1 + $0x2d8] sm:$0xff] }
  0x1e   :  { %203 = vmatpush.msra.mxu1 %v89_v58  ;;  %181 = vmatpush.msra.mxu0 %v72_v57  ;;  %57 = vst [vmem:[#allocation2 + $0x50] sm:$0x7f] %v45_v20  ;;  %v46_v24 = vld [vmem:[%s986_s0 + $0x58] sm:$0x7f] }
  0x1f   :  { %249 = vmatpush.msra.mxu3 %v121_v60  ;;  %227 = vmatpush.msra.mxu2 %v104_v59  ;;  %52 = vst [vmem:[#allocation2 + $0x28] sm:$0x7f] %v40_v22 }
  0x20   :  { %204 = vmatpush.msra.mxu1 %v88_v62  ;;  %182 = vmatpush.msra.mxu0 %v71_v3  ;;  %58 = vst [vmem:[#allocation2 + $0x58] sm:$0x7f] %v46_v24 }
  0x21   :  { %250 = vmatpush.msra.mxu3 %v120_v63  ;;  %228 = vmatpush.msra.mxu2 %v103_v4 }
  0x22   :  { %259 = vmatpush.msrb.mxu0 %v150_v5  ;;  %205 = vmatpush.msra.mxu1 %v87_v8 }
  0x23   :  { %499 = vmatpush.msrb.mxu2 %v150_v5  ;;  %251 = vmatpush.msra.mxu3 %v119_v9 }
  0x24   :  { %260 = vmatpush.msrb.mxu0 %v149_v11  ;;  %282 = vmatpush.msrb.mxu1 %v166_v13 }
  0x25   :  { %500 = vmatpush.msrb.mxu2 %v149_v11  ;;  %515 = vmatpush.msrb.mxu3 %v166_v13 }
  0x26   :  { %261 = vmatpush.msrb.mxu0 %v148_v15  ;;  %283 = vmatpush.msrb.mxu1 %v165_v16 }
  0x27   :  { %501 = vmatpush.msrb.mxu2 %v148_v15  ;;  %516 = vmatpush.msrb.mxu3 %v165_v16 }
  0x28   :  { %262 = vmatpush.msrb.mxu0 %v147_v17  ;;  %284 = vmatpush.msrb.mxu1 %v164_v19 }
  0x29   :  { %502 = vmatpush.msrb.mxu2 %v147_v17  ;;  %517 = vmatpush.msrb.mxu3 %v164_v19 }
  0x2a   :  { %263 = vmatpush.msrb.mxu0 %v146_v21 }
  0x2b   :  { %503 = vmatpush.msrb.mxu2 %v146_v21 }
  0x2c   :  { %10 = vsyncpa [#allocation4], 0  ;;  %285 = vmatpush.msrb.mxu1 %v163_v23  ;;  %518 = vmatpush.msrb.mxu3 %v163_v23  ;;  %v61_v27 = vld [vmem:[#allocation2 + $0x10] sm:$0xff]  ;;  %v144_v28 = vld [vmem:[%s987_s1 + $0x248] sm:$0xff]  ;;  %s568_s9 = smov 4   ;;  %s571_s10 = smov 124  }
  0x2d   :  { %264 = vmatpush.msrb.mxu0 %v145_v25  ;;  %504 = vmatpush.msrb.mxu2 %v145_v25  ;;  %v161_v29 = vld [vmem:[%s987_s1 + $0x2d0] sm:$0xff]  ;;  %v143_v30 = vld [vmem:[%s987_s1 + $0x240] sm:$0xff]  ;;  %v62_v31 = vld [vmem:[#allocation2 + $0x18] sm:$0xff]  ;;  %s572_s13 = smov 12   ;;  %vm381_vm1 = vcmask 94272   ;;  %vm440_vm2 = vcmask 191648  }
  0x2e   :  { %286 = vmatpush.msrb.mxu1 %v162_v26  ;;  %519 = vmatpush.msrb.mxu3 %v162_v26  ;;  %v160_v32 = vld [vmem:[%s987_s1 + $0x2c8] sm:$0xff]  ;;  %v59_v33 = vld [vmem:[#allocation2] sm:$0xff]  ;;  %v142_v35 = vld [vmem:[%s987_s1 + $0x238] sm:$0xff]  ;;  %vm327_vm3 = vcmask 29696   ;;  %vm344_vm4 = vcmask 26624   ;;  %vm360_vm5 = vcmask 1041409  }
  0x2f   :  { %229 = vmatmul.f32.vlgmr.msra.gmra.mxu2 %v61_v27  ;;  %265 = vmatpush.msrb.mxu0 %v144_v28  ;;  %v60_v34 = vld [vmem:[#allocation2 + $0x8] sm:$0xff]  ;;  %v159_v36 = vld [vmem:[%s987_s1 + $0x2c0] sm:$0xff]  ;;  %v141_v37 = vld [vmem:[%s987_s1 + $0x230] sm:$0xff]  ;;  %s574_s16 = smov [#allocation3]   ;;  %s490_s19 = sshll.u32 %s991_s5, 4  ;;  %vm481_vm6 = vcmask 17408   ;;  %s491_s19 = int_to_ptr.hbm [resolvable:$true] %s490_s19 }
  0x30   :  { %505 = vmatpush.msrb.mxu2 %v144_v28  ;;  %287 = vmatpush.msrb.mxu1 %v161_v29  ;;  %v158_v38 = vld [vmem:[%s987_s1 + $0x2b8] sm:$0xff]  ;;  %v67_v39 = vld [vmem:[#allocation2 + $0x40] sm:$0xff]  ;;  %v140_v40 = vld [vmem:[%s987_s1 + $0x228] sm:$0xff]  ;;  %s488_s17 = sshll.u32 %s574_s16, 4  ;;  %s489_s17 = int_to_ptr.vmem [resolvable:$true] %s488_s17 }
  0x31   :  { %520 = vmatpush.msrb.mxu3 %v161_v29  ;;  %266 = vmatpush.msrb.mxu0 %v143_v30  ;;  %v157_v41 = vld [vmem:[%s987_s1 + $0x2b0] sm:$0xff]  ;;  %v139_v42 = vld [vmem:[%s987_s1 + $0x220] sm:$0xff]  ;;  %v68_v43 = vld [vmem:[#allocation2 + $0x48] sm:$0xff] }
  0x32   :  { %252 = vmatmul.f32.vlgmr.msra.gmra.mxu3 %v62_v31  ;;  %506 = vmatpush.msrb.mxu2 %v143_v30  ;;  %v156_v44 = vld [vmem:[%s987_s1 + $0x2a8] sm:$0xff]  ;;  %v65_v45 = vld [vmem:[#allocation2 + $0x30] sm:$0xff]  ;;  %v66_v46 = vld [vmem:[#allocation2 + $0x38] sm:$0xff] }
  0x33   :  { %288 = vmatpush.msrb.mxu1 %v160_v32  ;;  %521 = vmatpush.msrb.mxu3 %v160_v32  ;;  %v138_v47 = vld [vmem:[%s987_s1 + $0x218] sm:$0xff]  ;;  %v155_v48 = vld [vmem:[%s987_s1 + $0x2a0] sm:$0xff]  ;;  %v137_v49 = vld [vmem:[%s987_s1 + $0x210] sm:$0xff] }
  0x34   :  { %183 = vmatmul.f32.vlgmr.msra.gmra.mxu0 %v59_v33  ;;  %206 = vmatmul.f32.vlgmr.msra.gmra.mxu1 %v60_v34  ;;  %v154_v50 = vld [vmem:[%s987_s1 + $0x298] sm:$0xff]  ;;  %v136_v51 = vld [vmem:[%s987_s1 + $0x208] sm:$0xff]  ;;  %v153_v52 = vld [vmem:[%s987_s1 + $0x290] sm:$0xff] }
  0x35   :  { %267 = vmatpush.msrb.mxu0 %v142_v35  ;;  %507 = vmatpush.msrb.mxu2 %v142_v35  ;;  %v135_v53 = vld [vmem:[%s987_s1 + $0x200] sm:$0xff]  ;;  %v152_v54 = vld [vmem:[%s987_s1 + $0x288] sm:$0xff]  ;;  %v69_v56 = vld [vmem:[#allocation2 + $0x50] sm:$0xff] }
  0x36   :  { %289 = vmatpush.msrb.mxu1 %v159_v36  ;;  %522 = vmatpush.msrb.mxu3 %v159_v36  ;;  %v63_v55 = vld [vmem:[#allocation2 + $0x20] sm:$0xff]  ;;  %v64_v58 = vld [vmem:[#allocation2 + $0x28] sm:$0xff]  ;;  %v70_v59 = vld [vmem:[#allocation2 + $0x58] sm:$0xff] }
  0x37   :  { %268 = vmatpush.msrb.mxu0 %v141_v37  ;;  %508 = vmatpush.msrb.mxu2 %v141_v37  ;;  %v151_v57 = vld [vmem:[%s987_s1 + $0x280] sm:$0xff]  ;;  %s569_s1 = smov 116  }
  0x38   :  { %290 = vmatpush.msrb.mxu1 %v158_v38  ;;  %523 = vmatpush.msrb.mxu3 %v158_v38  ;;  %v945_v60 = vld [vmem:[%s988_s2] ss:$0 sm:$0xff]  ;;  %s570_s2 = smov 120  }
  0x39   :  { %232 = vmatmul.f32.gmra.mxu2 %v67_v39  ;;  %269 = vmatpush.msrb.mxu0 %v140_v40  ;;  %v953_v25 = vld [vmem:[%s989_s3] sm:$0x7]  ;;  %s573_s3 = smov 108  }
  0x3a   :  { %509 = vmatpush.msrb.mxu2 %v140_v40  ;;  %291 = vmatpush.msrb.mxu1 %v157_v41 }
  0x3b   :  { %524 = vmatpush.msrb.mxu3 %v157_v41  ;;  %270 = vmatpush.msrb.mxu0 %v139_v42 }
  0x3c   :  { %255 = vmatmul.f32.gmra.mxu3 %v68_v43  ;;  %510 = vmatpush.msrb.mxu2 %v139_v42 }
  0x3d   :  { %292 = vmatpush.msrb.mxu1 %v156_v44  ;;  %525 = vmatpush.msrb.mxu3 %v156_v44 }
  0x3e   :  { %186 = vmatmul.f32.gmra.mxu0 %v65_v45  ;;  %209 = vmatmul.f32.gmra.mxu1 %v66_v46 }
  0x3f   :  { %271 = vmatpush.msrb.mxu0 %v138_v47  ;;  %511 = vmatpush.msrb.mxu2 %v138_v47 }
  0x40   :  { %293 = vmatpush.msrb.mxu1 %v155_v48  ;;  %526 = vmatpush.msrb.mxu3 %v155_v48 }
  0x41   :  { %272 = vmatpush.msrb.mxu0 %v137_v49  ;;  %512 = vmatpush.msrb.mxu2 %v137_v49 }
  0x42   :  { %294 = vmatpush.msrb.mxu1 %v154_v50  ;;  %527 = vmatpush.msrb.mxu3 %v154_v50 }
  0x43   :  { %273 = vmatpush.msrb.mxu0 %v136_v51  ;;  %513 = vmatpush.msrb.mxu2 %v136_v51 }
  0x44   :  { %295 = vmatpush.msrb.mxu1 %v153_v52  ;;  %528 = vmatpush.msrb.mxu3 %v153_v52 }
  0x45   :  { %274 = vmatpush.msrb.mxu0 %v135_v53  ;;  %514 = vmatpush.msrb.mxu2 %v135_v53 }
  0x46   :  { %296 = vmatpush.msrb.mxu1 %v152_v54  ;;  %529 = vmatpush.msrb.mxu3 %v152_v54 }
  0x47   :  { %275 = vmatmul.f32.vlgmr.msrb.gmra.mxu0 %v63_v55  ;;  %278 = vmatmul.f32.vlgmr.msrb.gmra.mxu2 %v69_v56 }
  0x48   :  { %297 = vmatpush.msrb.mxu1 %v151_v57  ;;  %530 = vmatpush.msrb.mxu3 %v151_v57 }
  0x49   :  { %298 = vmatmul.f32.vlgmr.msrb.gmra.mxu1 %v64_v58  ;;  %301 = vmatmul.f32.vlgmr.msrb.gmra.mxu3 %v70_v59 }
  0x4a   :  { %374 = vrot.lane.b32.xlu2 %v945_v60, %s568_s9 }
  0xa4   :  { %v375_v29 = vpop.permute.xlu2 %374 }
  0xb1   :  { %v184_v61 = vpop.f32.mrf.mxu0  ;;  %v207_v62 = vpop.f32.mrf.mxu1 }
  0xb2   :  { %v230_v63 = vpop.f32.mrf.mxu2  ;;  %v208_v1 = vadd.f32 %v207_v62, %v184_v61 }
  0xb4   :  { %v231_v4 = vadd.f32 %v230_v63, %v208_v1 }
  0xb5   :  { %v253_v0 = vpop.f32.mrf.mxu3 }
  0xb6   :  { %v254_v8 = vadd.f32 %v253_v0, %v231_v4 }
  0xbb   :  { %v187_v2 = vpop.f32.mrf.mxu0  ;;  %v210_v3 = vpop.f32.mrf.mxu1 }
  0xbc   :  { %v211_v5 = vadd.f32 %v210_v3, %v187_v2  ;;  %v233_v7 = vpop.f32.mrf.mxu2 }
  0xbe   :  { %v234_v11 = vadd.f32 %v233_v7, %v211_v5 }
  0xbf   :  { %v256_v9 = vpop.f32.mrf.mxu3 }
  0xc0   :  { %v257_v15 = vadd.f32 %v256_v9, %v234_v11 }
  0xc4   :  { %v276_v10 = vpop.f32.mrf.mxu0 }
  0xc5   :  { %v277_v12 = vadd.f32 %v276_v10, %v254_v8 }
  0xc6   :  { %v299_v13 = vpop.f32.mrf.mxu1 }
  0xc7   :  { %v300_v14 = vadd.f32 %v299_v13, %v277_v12 }
  0xc9   :  { %v423_v16 = vrot.slane %v300_v14, 3  ;;  %v364_v17 = vrot.slane %v300_v14, 2  ;;  %v310_v18 = vrot.slane %v300_v14, 1 }
  0xca   :  { %v279_v19 = vpop.f32.mrf.mxu2 }
  0xcb   :  { %v280_v20 = vadd.f32 %v279_v19, %v257_v15  ;;  %425 = vrot.lane.b32.xlu2 %v423_v16, %s569_s1  ;;  %366 = vrot.lane.b32.xlu1 %v364_v17, %s570_s2 }
  0xcc   :  { %312 = vrot.lane.b32.xlu0 %v310_v18, %s571_s10  ;;  %v302_v21 = vpop.f32.mrf.mxu3 }
  0xcd   :  { %v303_v22 = vadd.f32 %v302_v21, %v280_v20 }
  0xcf   :  { %v365_v23 = vrot.slane %v303_v22, 2  ;;  %v311_v24 = vrot.slane %v303_v22, 1  ;;  %v424_v26 = vrot.slane %v303_v22, 3 }
  0xd3   :  { %368 = vrot.lane.b32.xlu1 %v365_v23, %s570_s2  ;;  %397 = vrot.lane.b32.xlu2 %v953_v25, %s568_s9 }
  0xd4   :  { %314 = vrot.lane.b32.xlu0 %v311_v24, %s571_s10 }
  0xdb   :  { %433 = vrot.lane.b32.xlu1 %v945_v60, %s572_s13 }
  0xdc   :  { %427 = vrot.lane.b32.xlu0 %v424_v26, %s569_s1 }
  0xe4   :  { %455 = vrot.lane.b32.xlu0 %v953_v25, %s572_s13 }
 0x125   :  { %v426_v39 = vpop.permute.xlu2 %425 }
 0x12d   :  { %v398_v56 = vpop.permute.xlu2 %397 }
 0x13d   :  { %v367_v27 = vpop.permute.xlu1 %366 }
 0x13e   :  { %v313_v28 = vpop.permute.xlu0 %312 }
 0x13f   :  { %v318_v30 = vadd.f32 %v313_v28, %v300_v14 }
 0x141   :  { %v372_v31 = vadd.f32 %v367_v27, %v318_v30  ;;  %v323_v18 = vadd.f32 %v945_v60, %v318_v30 }
 0x143   :  { %v377_v32 = vadd.f32 %v375_v29, %v372_v31  ;;  %v431_v43 = vadd.f32 %v426_v39, %v372_v31 }
 0x145   :  { %v379_v33 = vmax.f32 %v377_v32, 0.0  ;;  %v369_v34 = vpop.permute.xlu1 %368 }
 0x146   :  { %v315_v35 = vpop.permute.xlu0 %314 }
 0x147   :  { %v382_v36 = vsel %vm381_vm1, %v379_v33, -inf  ;;  %v319_v37 = vadd.f32 %v315_v35, %v303_v22  ;;  %v325_v22 = vmax.f32 %v323_v18, 0.0 }
 0x148   :  { %v383_v38 = vrot.slane %v382_v36, 4 }
 0x149   :  { %v373_v40 = vadd.f32 %v369_v34, %v319_v37  ;;  %v324_v23 = vadd.f32 %v945_v60, %v319_v37  ;;  %v328_v24 = vsel %vm327_vm3, %v325_v22, -inf }
 0x14a   :  { %v384_v41 = vmax.f32 %v382_v36, %v383_v38  ;;  %v329_v27 = vrot.slane %v328_v24, 4 }
 0x14b   :  { %v378_v42 = vadd.f32 %v375_v29, %v373_v40  ;;  %v326_v26 = vmax.f32 %v324_v23, 0.0 }
 0x14c   :  { %v385_v44 = vrot.slane %v384_v41, 2  ;;  %v330_v29 = vmax.f32 %v328_v24, %v329_v27 }
 0x14d   :  { %v434_v45 = vpop.permute.xlu1 %433  ;;  %v380_v46 = vmax.f32 %v378_v42, 0.0  ;;  %v335_v28 = vsel %vm327_vm3, %v326_v26, -inf }
 0x14e   :  { %v436_v47 = vadd.f32 %v434_v45, %v431_v43  ;;  %v428_v48 = vpop.permute.xlu0 %427  ;;  %v386_v49 = vmax.f32 %v384_v41, %v385_v44  ;;  %v336_v31 = vrot.slane %v335_v28, 4  ;;  %v331_v32 = vrot.slane %v330_v29, 2 }
 0x14f   :  { %v389_v50 = vsel %vm381_vm1, %v380_v46, -inf  ;;  %v432_v51 = vadd.f32 %v428_v48, %v373_v40 }
 0x150   :  { %v438_v52 = vmax.f32 %v436_v47, 0.0  ;;  %v390_v53 = vrot.slane %v389_v50, 4  ;;  %v387_v54 = vrot.slane %v386_v49, 1  ;;  %v337_v33 = vmax.f32 %v335_v28, %v336_v31 }
 0x151   :  { %v437_v55 = vadd.f32 %v434_v45, %v432_v51  ;;  %v332_v30 = vmax.f32 %v330_v29, %v331_v32 }
 0x152   :  { %v441_v57 = vsel %vm440_vm2, %v438_v52, -inf  ;;  %v388_v58 = vmax.f32 %v386_v49, %v387_v54  ;;  %v391_v59 = vmax.f32 %v389_v50, %v390_v53  ;;  %v338_v34 = vrot.slane %v337_v33, 2 }
 0x153   :  { %v442_v61 = vrot.slane %v441_v57, 4  ;;  %v439_v62 = vmax.f32 %v437_v55, 0.0  ;;  %v333_v35 = vrot.slane %v332_v30, 1  ;;  %v357_v53 = vand.u32 127, %v25_v6 }
 0x154   :  { %v392_v63 = vrot.slane %v391_v59, 2  ;;  %v400_v0 = vmul.f32 %v398_v56, %v388_v58  ;;  %v339_v36 = vmax.f32 %v337_v33, %v338_v34  ;;  %v540_v58 = vld [vmem:[%s990_s4] ss:$0 sm:$0xff] }
 0x155   :  { %v443_v1 = vmax.f32 %v441_v57, %v442_v61  ;;  %v448_v2 = vsel %vm440_vm2, %v439_v62, -inf  ;;  %v334_v38 = vmax.f32 %v332_v30, %v333_v35 }
 0x156   :  { %v449_v3 = vrot.slane %v448_v2, 4  ;;  %v393_v4 = vmax.f32 %v391_v59, %v392_v63  ;;  %404 = vrot.lane.b32.xlu1 %v400_v0, %s570_s2  ;;  %v456_v15 = vpop.permute.xlu0 %455  ;;  %v340_v39 = vrot.slane %v339_v36, 1 }
 0x157   :  { %v444_v5 = vrot.slane %v443_v1, 2  ;;  %v342_v40 = vmul.f32 %v334_v38, %v953_v25 }
 0x158   :  { %v450_v7 = vmax.f32 %v448_v2, %v449_v3  ;;  %v394_v8 = vrot.slane %v393_v4, 1  ;;  %v341_v41 = vmax.f32 %v339_v36, %v340_v39 }
 0x159   :  { %v445_v9 = vmax.f32 %v443_v1, %v444_v5  ;;  %v345_v60 = vsel %vm344_vm4, %v342_v40, 0.0 }
 0x15a   :  { %v395_v10 = vmax.f32 %v393_v4, %v394_v8  ;;  %v451_v11 = vrot.slane %v450_v7, 2  ;;  %v343_v37 = vmul.f32 %v341_v41, %v953_v25 }
 0x15b   :  { %v446_v12 = vrot.slane %v445_v9, 1 }
 0x15c   :  { %v401_v13 = vmul.f32 %v398_v56, %v395_v10  ;;  %v452_v14 = vmax.f32 %v450_v7, %v451_v11  ;;  %v348_v42 = vsel %vm344_vm4, %v343_v37, 0.0 }
 0x15d   :  { %v447_v16 = vmax.f32 %v445_v9, %v446_v12 }
 0x15e   :  { %406 = vrot.lane.b32.xlu2 %v401_v13, %s570_s2  ;;  %v453_v17 = vrot.slane %v452_v14, 1 }
 0x15f   :  { %v458_v19 = vmul.f32 %v456_v15, %v447_v16 }
 0x160   :  { %v454_v20 = vmax.f32 %v452_v14, %v453_v17 }
 0x161   :  { %462 = vrot.lane.b32.xlu0 %v458_v19, %s573_s3 }
 0x162   :  { %v459_v21 = vmul.f32 %v456_v15, %v454_v20 }
 0x164   :  { %464 = vrot.lane.b32.xlu1 %v459_v21, %s573_s3 }
 0x187   :  { %346 = vadd.xlane.f32.xlu2 %v345_v60 }
 0x18b   :  { %349 = vadd.xlane.f32.xlu0 %v348_v42 }
 0x1b8   :  { %v407_v43 = vpop.permute.xlu2 %406 }
 0x1b9   :  { %v413_v44 = vsel %vm344_vm4, %v407_v43, 0.0 }
 0x1ba   :  { %414 = vadd.xlane.f32.xlu2 %v413_v44 }
 0x1c8   :  { %v405_v45 = vpop.permute.xlu1 %404 }
 0x1c9   :  { %v410_v46 = vsel %vm344_vm4, %v405_v45, 0.0 }
 0x1ca   :  { %411 = vadd.xlane.f32.xlu1 %v410_v46 }
 0x1d3   :  { %v463_v47 = vpop.permute.xlu0 %462 }
 0x1d4   :  { %v468_v48 = vsel %vm344_vm4, %v463_v47, 0.0 }
 0x1d5   :  { %469 = vadd.xlane.f32.xlu2 %v468_v48 }
 0x1d6   :  { %v465_v49 = vpop.permute.xlu1 %464 }
 0x1d7   :  { %v471_v50 = vsel %vm344_vm4, %v465_v49, 0.0 }
 0x1d8   :  { %472 = vadd.xlane.f32.xlu0 %v471_v50 }
 0x1fa   :  { %v347_v25 = vpop.xlane.xlu2 %346 }
 0x1fb   :  { %v358_v56 = vperm.slane %v347_v25, %v357_v53 }
 0x1fe   :  { %v350_v51 = vpop.xlane.xlu0 %349 }
 0x1ff   :  { %v359_v55 = vperm.slane %v350_v51, %v357_v53 }
 0x201   :  { %v361_v59 = vsel %vm360_vm5, %v359_v55, %v358_v56 }
 0x202   :  { %v363_v0 = vadd.f32 %v540_v58, %v361_v59 }
 0x22d   :  { %v415_v52 = vpop.xlane.xlu2 %414 }
 0x22e   :  { %v419_v61 = vperm.slane %v415_v52, %v357_v53 }
 0x23d   :  { %v412_v54 = vpop.xlane.xlu1 %411 }
 0x23e   :  { %v418_v57 = vperm.slane %v412_v54, %v357_v53 }
 0x240   :  { %v420_v63 = vsel %vm360_vm5, %v419_v61, %v418_v57 }
 0x241   :  { %v422_v6 = vadd.f32 %v420_v63, %v363_v0 }
 0x248   :  { %v470_v62 = vpop.xlane.xlu2 %469 }
 0x249   :  { %v476_v2 = vperm.slane %v470_v62, %v357_v53 }
 0x24b   :  { %v473_v1 = vpop.xlane.xlu0 %472 }
 0x24c   :  { %v477_v3 = vperm.slane %v473_v1, %v357_v53 }
 0x24e   :  { %v478_v4 = vsel %vm360_vm5, %v477_v3, %v476_v2 }
 0x24f   :  { %v480_v5 = vadd.f32 %v478_v4, %v422_v6 }
 0x251   :  { %482 = vst.msk [vmem:[#allocation3] sm:$0x3] %vm481_vm6, %v480_v5 }
 0x252   :  { %493 = dma.vmem_to_hbm [thread:$0]  %s489_s17, 32, %s491_s19, [#allocation4]  }
 0x253   :  { %565 = dma.done.wait [#allocation4], 32  }
 0x254   :  { %566 = vsyncadd [#allocation4], 4294967264 }
 0x255   :  { %498 = vsyncpa [#allocation4], 1 }

</bundles_post_ra>
